<compile_context>
chip_gen: v7x
topology: tpu7x:2x2x1
jax: 0.10.0
libtpu: 0.0.40
codegen_flags: <defaults>
</compile_context>

<pallas_src>
import functools

import jax
import jax.numpy as jnp
from jax import lax
from jax.experimental import pallas as pl
from jax.experimental.pallas import tpu as pltpu


def _mixup_kernel(perm_ref, x_ref, lam_ref, y_ref, yp_ref, x_hbm,
                  xo_ref, yo_ref, buf, sem,
                  *, rows, true_val, false_val, compute_dtype):
    # perm_ref : scalar-prefetch SMEM (B,) int32
    # x_ref    : (R, D) rows [i*R, (i+1)*R) of x      (native dtype)
    # lam_ref  : (R, 1) f32 mixing lambdas
    # y_ref    : (R, 1) int32 class ids of y
    # yp_ref   : (R, 1) int32 class ids of y[perm]
    # x_hbm    : (B, D) un-tiled x (HBM), gather source
    # xo_ref   : (R, D) mixed images                  (native dtype)
    # yo_ref   : (R, NC) mixed smoothed one-hot labels
    # buf      : (R, D) VMEM scratch for gathered x[perm] rows
    # sem      : (R,) DMA semaphores
    i = pl.program_id(0)
    base = i * rows

    # 1) Kick off the row gather x[perm[base+r]] -> buf[r] (R concurrent DMAs).
    copies = []
    for r in range(rows):                         # static unroll (rows is small)
        src_row = perm_ref[base + r]
        cp = pltpu.make_async_copy(
            x_hbm.at[pl.ds(src_row, 1)],          # (1, D) HBM row
            buf.at[pl.ds(r, 1)],                  # (1, D) VMEM slot
            sem.at[r])
        cp.start()
        copies.append(cp)

    # 2) Label smoothing + mix (independent of the gather -> overlaps the DMAs).
    lam = lam_ref[...]                                             # (R, 1) f32
    col = lax.broadcasted_iota(jnp.int32, yo_ref.shape, 1)         # (R, NC)
    my1 = jnp.where(col == y_ref[...], true_val, false_val)        # (R, NC) f32
    my2 = jnp.where(col == yp_ref[...], true_val, false_val)
    yo_ref[...] = (my1 + (my2 - my1) * lam).astype(yo_ref.dtype)

    # 3) Image mix: x + (x[perm] - x) * lam.
    for cp in copies:
        cp.wait()
    a = x_ref[...].astype(compute_dtype)                           # (R, D)
    b = buf[...].astype(compute_dtype)                             # (R, D)
    lam_c = lam.astype(compute_dtype)
    xo_ref[...] = (a + (b - a) * lam_c).astype(xo_ref.dtype)


def mixup_pallas(x, y, lambdas, perm, *, num_classes, gamma, smooth_eps):
    """Forward of Mixup.  lambdas: (B,) f32 Beta samples; perm: (B,) int32."""
    if gamma == 0 and smooth_eps == 0:
        # Matches the torch module: raw (x, y) passthrough.
        return x, y

    B = x.shape[0]
    D = 1
    for s in x.shape[1:]:
        D *= int(s)

    x_flat = x.reshape(B, D)                     # free view, no extra HBM pass
    out_dtype = x.dtype
    # bf16-native compute on chips with bf16 VPU; f32 otherwise.
    compute_dtype = jnp.bfloat16 if x.dtype == jnp.bfloat16 else jnp.float32

    lambdas = lambdas.astype(jnp.float32).reshape(B, 1)
    perm = perm.astype(jnp.int32)
    y32 = y.astype(jnp.int32).reshape(B, 1)
    yp32 = jnp.take(y.astype(jnp.int32), perm).reshape(B, 1)   # tiny glue gather

    # Smoothed one-hot values (hot entry gets true_class + false_class).
    denom = (num_classes - 1) if num_classes > 1 else 1
    true_class = float(1.0 - smooth_eps * num_classes / denom)
    false_class = float(smooth_eps / denom)

    # ---- rows-per-step selection ------------------------------------------
    row_bytes = D * jnp.dtype(x.dtype).itemsize
    MAX_ROWS = 32                       # static-unroll / code-size cap
    TARGET_GATHER_BYTES = 2 << 20       # ~2 MiB of gathered rows per step
    r_cap = min(B, MAX_ROWS, max(1, TARGET_GATHER_BYTES // max(row_bytes, 1)))
    if B <= r_cap:
        rows = B
    else:
        # Need rows % 8 == 0 (sublane tile) and rows | B.
        div8 = [c for c in range(8, r_cap + 1, 8) if B % c == 0]
        if div8:
            rows = div8[-1]
        else:
            small = [c for c in range(8, B + 1, 8) if B % c == 0]
            rows = small[0] if small else B
    grid = (B // rows,)

    # Working set: 2x double-buffered input rows + 2x output rows + gather buf.
    work_bytes = 5 * rows * row_bytes + 8 * rows * (num_classes + 4)
    vmem_limit = int(min(max(32 << 20, 2 * work_bytes), 48 << 20))

    grid_spec = pltpu.PrefetchScalarGridSpec(
        num_scalar_prefetch=1,                                     # perm -> SMEM
        grid=grid,
        in_specs=[
            pl.BlockSpec((rows, D), lambda i, perm: (i, 0)),       # x rows i*R..
            pl.BlockSpec((rows, 1), lambda i, perm: (i, 0)),       # lambdas
            pl.BlockSpec((rows, 1), lambda i, perm: (i, 0)),       # y
            pl.BlockSpec((rows, 1), lambda i, perm: (i, 0)),       # y[perm]
            pl.BlockSpec(memory_space=pl.ANY),                     # x, gather src
        ],
        out_specs=[
            pl.BlockSpec((rows, D), lambda i, perm: (i, 0)),             # mixed x
            pl.BlockSpec((rows, num_classes), lambda i, perm: (i, 0)),   # labels
        ],
        scratch_shapes=[
            pltpu.VMEM((rows, D), x.dtype),            # gathered x[perm] rows
            pltpu.SemaphoreType.DMA((rows,)),
        ],
    )

    kernel = functools.partial(
        _mixup_kernel,
        rows=rows,
        true_val=true_class + false_class,
        false_val=false_class,
        compute_dtype=compute_dtype)

    x_mix_flat, y_mix = pl.pallas_call(
        kernel,
        grid_spec=grid_spec,
        out_shape=(jax.ShapeDtypeStruct((B, D), out_dtype),
                   jax.ShapeDtypeStruct((B, num_classes), out_dtype)),
        compiler_params=pltpu.CompilerParams(
            dimension_semantics=("parallel",),
            vmem_limit_bytes=vmem_limit),
    )(perm, x_flat, lambdas, y32, yp32, x_flat)

    return x_mix_flat.reshape(x.shape), y_mix


def _reference(x, y, lambdas, perm, *, num_classes, smooth_eps):
    """Pure-JAX reference of the intended mixup semantics."""
    B = x.shape[0]
    true_class = 1.0 - smooth_eps * num_classes / (num_classes - 1)
    false_class = smooth_eps / (num_classes - 1)
    my = jax.nn.one_hot(y, num_classes, dtype=jnp.float32)
    my = my * true_class + jnp.ones_like(my) * false_class
    lam_x = lambdas.reshape((B,) + (1,) * (x.ndim - 1))
    lam_y = lambdas.reshape(B, 1)
    x2 = x[perm]
    y2 = my[perm]
    return x * (1 - lam_x) + x2 * lam_x, my * (1 - lam_y) + y2 * lam_y


if __name__ == "__main__":
    NUM_CLASSES = 128
    GAMMA = 0.2
    SMOOTH_EPS = 0.1

    B, C, H, W = 8, 4, 16, 16
    key = jax.random.PRNGKey(0)
    kx, ky, kl, kp = jax.random.split(key, 4)

    x = jax.random.normal(kx, (B, C, H, W), dtype=jnp.float32)
    y = jax.random.randint(ky, (B,), 0, NUM_CLASSES, dtype=jnp.int32)

    # Glue randomness (Beta sample + batch permutation), as in torch forward.
    lambdas = jax.random.beta(kl, GAMMA, GAMMA, (B,)).astype(jnp.float32)
    perm = jax.random.permutation(kp, B).astype(jnp.int32)

    x_mix, y_mix = mixup_pallas(
        x, y, lambdas, perm,
        num_classes=NUM_CLASSES, gamma=GAMMA, smooth_eps=SMOOTH_EPS)
    jax.block_until_ready((x_mix, y_mix))

    x_ref, y_ref = _reference(
        x, y, lambdas, perm, num_classes=NUM_CLASSES, smooth_eps=SMOOTH_EPS)

    assert x_mix.shape == x.shape and x_mix.dtype == x.dtype
    assert y_mix.shape == (B, NUM_CLASSES) and y_mix.dtype == x.dtype
    assert jnp.allclose(x_mix, x_ref, atol=1e-5, rtol=1e-5)
    assert jnp.allclose(y_mix.astype(jnp.float32), y_ref, atol=1e-5, rtol=1e-5)

    print("KERNEL_OK")
</pallas_src>

<mosaic_0001>
module attributes {stable_mosaic.version = 11 : i64} {
  func.func @_mixup_kernel(%arg0: i32, %arg1: memref<8xi32, #tpu.memory_space<smem>>, %arg2: memref<8x1024xf32, #tpu.memory_space<vmem>>, %arg3: memref<8x1xf32, #tpu.memory_space<vmem>>, %arg4: memref<8x1xi32, #tpu.memory_space<vmem>>, %arg5: memref<8x1xi32, #tpu.memory_space<vmem>>, %arg6: memref<8x1024xf32, #tpu.memory_space<any>>, %arg7: memref<8x1024xf32, #tpu.memory_space<vmem>>, %arg8: memref<8x128xf32, #tpu.memory_space<vmem>>, %arg9: memref<8x1024xf32, #tpu.memory_space<vmem>>, %arg10: memref<8x!tpu.dma_semaphore, #tpu.memory_space<semaphore_mem>>) attributes {dimension_semantics = [#tpu.dimension_semantics<parallel>], iteration_bounds = array<i64: 1>, scalar_prefetch = 1 : i64, scratch_operands = 2 : i64, tpu.core_type = #tpu.core_type<tc>, window_params = [{transform_indices = @transform_0, window_bounds = array<i64: 8, 1024>}, {transform_indices = @transform_1, window_bounds = array<i64: 8, 1>}, {transform_indices = @transform_2, window_bounds = array<i64: 8, 1>}, {transform_indices = @transform_3, window_bounds = array<i64: 8, 1>}, {}, {transform_indices = @transform_5, window_bounds = array<i64: 8, 1024>}, {transform_indices = @transform_6, window_bounds = array<i64: 8, 128>}]} {
    %c8_i32 = arith.constant 8 : i32
    %0 = arith.muli %arg0, %c8_i32 : i32
    %c0_i32 = arith.constant 0 : i32
    %1 = arith.addi %0, %c0_i32 : i32
    %2 = arith.index_cast %1 : i32 to index
    %3 = memref.load %arg1[%2] : memref<8xi32, #tpu.memory_space<smem>>
    %c0_i32_0 = arith.constant 0 : i32
    %c0_i32_1 = arith.constant 0 : i32
    %4 = tpu.memref_slice %arg6[%3, %c0_i32_1] : memref<8x1024xf32, #tpu.memory_space<any>> -> memref<1x1024xf32, #tpu.memory_space<any>>
    %c0_i32_2 = arith.constant 0 : i32
    %c0_i32_3 = arith.constant 0 : i32
    %5 = tpu.memref_slice %arg9[%c0_i32_2, %c0_i32_3] : memref<8x1024xf32, #tpu.memory_space<vmem>> -> memref<1x1024xf32, #tpu.memory_space<vmem>>
    %6 = tpu.memref_slice %arg10[%c0_i32_0] : memref<8x!tpu.dma_semaphore, #tpu.memory_space<semaphore_mem>> -> memref<1x!tpu.dma_semaphore, #tpu.memory_space<semaphore_mem>>
    %7 = tpu.memref_squeeze %6 : memref<1x!tpu.dma_semaphore, #tpu.memory_space<semaphore_mem>> -> memref<!tpu.dma_semaphore, #tpu.memory_space<semaphore_mem>>
    tpu.enqueue_dma source(%4 : memref<1x1024xf32, #tpu.memory_space<any>>) target(%5 : memref<1x1024xf32, #tpu.memory_space<vmem>>) target_semaphore(%7 : memref<!tpu.dma_semaphore, #tpu.memory_space<semaphore_mem>>)
    %c1_i32 = arith.constant 1 : i32
    %8 = arith.addi %0, %c1_i32 : i32
    %9 = arith.index_cast %8 : i32 to index
    %10 = memref.load %arg1[%9] : memref<8xi32, #tpu.memory_space<smem>>
    %c1_i32_4 = arith.constant 1 : i32
    %c0_i32_5 = arith.constant 0 : i32
    %11 = tpu.memref_slice %arg6[%10, %c0_i32_5] : memref<8x1024xf32, #tpu.memory_space<any>> -> memref<1x1024xf32, #tpu.memory_space<any>>
    %c1_i32_6 = arith.constant 1 : i32
    %c0_i32_7 = arith.constant 0 : i32
    %12 = tpu.memref_slice %arg9[%c1_i32_6, %c0_i32_7] : memref<8x1024xf32, #tpu.memory_space<vmem>> -> memref<1x1024xf32, #tpu.memory_space<vmem>>
    %13 = tpu.memref_slice %arg10[%c1_i32_4] : memref<8x!tpu.dma_semaphore, #tpu.memory_space<semaphore_mem>> -> memref<1x!tpu.dma_semaphore, #tpu.memory_space<semaphore_mem>>
    %14 = tpu.memref_squeeze %13 : memref<1x!tpu.dma_semaphore, #tpu.memory_space<semaphore_mem>> -> memref<!tpu.dma_semaphore, #tpu.memory_space<semaphore_mem>>
    tpu.enqueue_dma source(%11 : memref<1x1024xf32, #tpu.memory_space<any>>) target(%12 : memref<1x1024xf32, #tpu.memory_space<vmem>>) target_semaphore(%14 : memref<!tpu.dma_semaphore, #tpu.memory_space<semaphore_mem>>)
    %c2_i32 = arith.constant 2 : i32
    %15 = arith.addi %0, %c2_i32 : i32
    %16 = arith.index_cast %15 : i32 to index
    %17 = memref.load %arg1[%16] : memref<8xi32, #tpu.memory_space<smem>>
    %c2_i32_8 = arith.constant 2 : i32
    %c0_i32_9 = arith.constant 0 : i32
    %18 = tpu.memref_slice %arg6[%17, %c0_i32_9] : memref<8x1024xf32, #tpu.memory_space<any>> -> memref<1x1024xf32, #tpu.memory_space<any>>
    %c2_i32_10 = arith.constant 2 : i32
    %c0_i32_11 = arith.constant 0 : i32
    %19 = tpu.memref_slice %arg9[%c2_i32_10, %c0_i32_11] : memref<8x1024xf32, #tpu.memory_space<vmem>> -> memref<1x1024xf32, #tpu.memory_space<vmem>>
    %20 = tpu.memref_slice %arg10[%c2_i32_8] : memref<8x!tpu.dma_semaphore, #tpu.memory_space<semaphore_mem>> -> memref<1x!tpu.dma_semaphore, #tpu.memory_space<semaphore_mem>>
    %21 = tpu.memref_squeeze %20 : memref<1x!tpu.dma_semaphore, #tpu.memory_space<semaphore_mem>> -> memref<!tpu.dma_semaphore, #tpu.memory_space<semaphore_mem>>
    tpu.enqueue_dma source(%18 : memref<1x1024xf32, #tpu.memory_space<any>>) target(%19 : memref<1x1024xf32, #tpu.memory_space<vmem>>) target_semaphore(%21 : memref<!tpu.dma_semaphore, #tpu.memory_space<semaphore_mem>>)
    %c3_i32 = arith.constant 3 : i32
    %22 = arith.addi %0, %c3_i32 : i32
    %23 = arith.index_cast %22 : i32 to index
    %24 = memref.load %arg1[%23] : memref<8xi32, #tpu.memory_space<smem>>
    %c3_i32_12 = arith.constant 3 : i32
    %c0_i32_13 = arith.constant 0 : i32
    %25 = tpu.memref_slice %arg6[%24, %c0_i32_13] : memref<8x1024xf32, #tpu.memory_space<any>> -> memref<1x1024xf32, #tpu.memory_space<any>>
    %c3_i32_14 = arith.constant 3 : i32
    %c0_i32_15 = arith.constant 0 : i32
    %26 = tpu.memref_slice %arg9[%c3_i32_14, %c0_i32_15] : memref<8x1024xf32, #tpu.memory_space<vmem>> -> memref<1x1024xf32, #tpu.memory_space<vmem>>
    %27 = tpu.memref_slice %arg10[%c3_i32_12] : memref<8x!tpu.dma_semaphore, #tpu.memory_space<semaphore_mem>> -> memref<1x!tpu.dma_semaphore, #tpu.memory_space<semaphore_mem>>
    %28 = tpu.memref_squeeze %27 : memref<1x!tpu.dma_semaphore, #tpu.memory_space<semaphore_mem>> -> memref<!tpu.dma_semaphore, #tpu.memory_space<semaphore_mem>>
    tpu.enqueue_dma source(%25 : memref<1x1024xf32, #tpu.memory_space<any>>) target(%26 : memref<1x1024xf32, #tpu.memory_space<vmem>>) target_semaphore(%28 : memref<!tpu.dma_semaphore, #tpu.memory_space<semaphore_mem>>)
    %c4_i32 = arith.constant 4 : i32
    %29 = arith.addi %0, %c4_i32 : i32
    %30 = arith.index_cast %29 : i32 to index
    %31 = memref.load %arg1[%30] : memref<8xi32, #tpu.memory_space<smem>>
    %c4_i32_16 = arith.constant 4 : i32
    %c0_i32_17 = arith.constant 0 : i32
    %32 = tpu.memref_slice %arg6[%31, %c0_i32_17] : memref<8x1024xf32, #tpu.memory_space<any>> -> memref<1x1024xf32, #tpu.memory_space<any>>
    %c4_i32_18 = arith.constant 4 : i32
    %c0_i32_19 = arith.constant 0 : i32
    %33 = tpu.memref_slice %arg9[%c4_i32_18, %c0_i32_19] : memref<8x1024xf32, #tpu.memory_space<vmem>> -> memref<1x1024xf32, #tpu.memory_space<vmem>>
    %34 = tpu.memref_slice %arg10[%c4_i32_16] : memref<8x!tpu.dma_semaphore, #tpu.memory_space<semaphore_mem>> -> memref<1x!tpu.dma_semaphore, #tpu.memory_space<semaphore_mem>>
    %35 = tpu.memref_squeeze %34 : memref<1x!tpu.dma_semaphore, #tpu.memory_space<semaphore_mem>> -> memref<!tpu.dma_semaphore, #tpu.memory_space<semaphore_mem>>
    tpu.enqueue_dma source(%32 : memref<1x1024xf32, #tpu.memory_space<any>>) target(%33 : memref<1x1024xf32, #tpu.memory_space<vmem>>) target_semaphore(%35 : memref<!tpu.dma_semaphore, #tpu.memory_space<semaphore_mem>>)
    %c5_i32 = arith.constant 5 : i32
    %36 = arith.addi %0, %c5_i32 : i32
    %37 = arith.index_cast %36 : i32 to index
    %38 = memref.load %arg1[%37] : memref<8xi32, #tpu.memory_space<smem>>
    %c5_i32_20 = arith.constant 5 : i32
    %c0_i32_21 = arith.constant 0 : i32
    %39 = tpu.memref_slice %arg6[%38, %c0_i32_21] : memref<8x1024xf32, #tpu.memory_space<any>> -> memref<1x1024xf32, #tpu.memory_space<any>>
    %c5_i32_22 = arith.constant 5 : i32
    %c0_i32_23 = arith.constant 0 : i32
    %40 = tpu.memref_slice %arg9[%c5_i32_22, %c0_i32_23] : memref<8x1024xf32, #tpu.memory_space<vmem>> -> memref<1x1024xf32, #tpu.memory_space<vmem>>
    %41 = tpu.memref_slice %arg10[%c5_i32_20] : memref<8x!tpu.dma_semaphore, #tpu.memory_space<semaphore_mem>> -> memref<1x!tpu.dma_semaphore, #tpu.memory_space<semaphore_mem>>
    %42 = tpu.memref_squeeze %41 : memref<1x!tpu.dma_semaphore, #tpu.memory_space<semaphore_mem>> -> memref<!tpu.dma_semaphore, #tpu.memory_space<semaphore_mem>>
    tpu.enqueue_dma source(%39 : memref<1x1024xf32, #tpu.memory_space<any>>) target(%40 : memref<1x1024xf32, #tpu.memory_space<vmem>>) target_semaphore(%42 : memref<!tpu.dma_semaphore, #tpu.memory_space<semaphore_mem>>)
    %c6_i32 = arith.constant 6 : i32
    %43 = arith.addi %0, %c6_i32 : i32
    %44 = arith.index_cast %43 : i32 to index
    %45 = memref.load %arg1[%44] : memref<8xi32, #tpu.memory_space<smem>>
    %c6_i32_24 = arith.constant 6 : i32
    %c0_i32_25 = arith.constant 0 : i32
    %46 = tpu.memref_slice %arg6[%45, %c0_i32_25] : memref<8x1024xf32, #tpu.memory_space<any>> -> memref<1x1024xf32, #tpu.memory_space<any>>
    %c6_i32_26 = arith.constant 6 : i32
    %c0_i32_27 = arith.constant 0 : i32
    %47 = tpu.memref_slice %arg9[%c6_i32_26, %c0_i32_27] : memref<8x1024xf32, #tpu.memory_space<vmem>> -> memref<1x1024xf32, #tpu.memory_space<vmem>>
    %48 = tpu.memref_slice %arg10[%c6_i32_24] : memref<8x!tpu.dma_semaphore, #tpu.memory_space<semaphore_mem>> -> memref<1x!tpu.dma_semaphore, #tpu.memory_space<semaphore_mem>>
    %49 = tpu.memref_squeeze %48 : memref<1x!tpu.dma_semaphore, #tpu.memory_space<semaphore_mem>> -> memref<!tpu.dma_semaphore, #tpu.memory_space<semaphore_mem>>
    tpu.enqueue_dma source(%46 : memref<1x1024xf32, #tpu.memory_space<any>>) target(%47 : memref<1x1024xf32, #tpu.memory_space<vmem>>) target_semaphore(%49 : memref<!tpu.dma_semaphore, #tpu.memory_space<semaphore_mem>>)
    %c7_i32 = arith.constant 7 : i32
    %50 = arith.addi %0, %c7_i32 : i32
    %51 = arith.index_cast %50 : i32 to index
    %52 = memref.load %arg1[%51] : memref<8xi32, #tpu.memory_space<smem>>
    %c7_i32_28 = arith.constant 7 : i32
    %c0_i32_29 = arith.constant 0 : i32
    %53 = tpu.memref_slice %arg6[%52, %c0_i32_29] : memref<8x1024xf32, #tpu.memory_space<any>> -> memref<1x1024xf32, #tpu.memory_space<any>>
    %c7_i32_30 = arith.constant 7 : i32
    %c0_i32_31 = arith.constant 0 : i32
    %54 = tpu.memref_slice %arg9[%c7_i32_30, %c0_i32_31] : memref<8x1024xf32, #tpu.memory_space<vmem>> -> memref<1x1024xf32, #tpu.memory_space<vmem>>
    %55 = tpu.memref_slice %arg10[%c7_i32_28] : memref<8x!tpu.dma_semaphore, #tpu.memory_space<semaphore_mem>> -> memref<1x!tpu.dma_semaphore, #tpu.memory_space<semaphore_mem>>
    %56 = tpu.memref_squeeze %55 : memref<1x!tpu.dma_semaphore, #tpu.memory_space<semaphore_mem>> -> memref<!tpu.dma_semaphore, #tpu.memory_space<semaphore_mem>>
    tpu.enqueue_dma source(%53 : memref<1x1024xf32, #tpu.memory_space<any>>) target(%54 : memref<1x1024xf32, #tpu.memory_space<vmem>>) target_semaphore(%56 : memref<!tpu.dma_semaphore, #tpu.memory_space<semaphore_mem>>)
    %c0 = arith.constant 0 : index
    %c0_32 = arith.constant 0 : index
    %57 = vector.load %arg3[%c0, %c0_32] : memref<8x1xf32, #tpu.memory_space<vmem>>, vector<8x1xf32>
    %58 = tpu.iota {dimensions = array<i32: 1>} : vector<8x128xi32>
    %c0_33 = arith.constant 0 : index
    %c0_34 = arith.constant 0 : index
    %59 = vector.load %arg4[%c0_33, %c0_34] : memref<8x1xi32, #tpu.memory_space<vmem>>, vector<8x1xi32>
    %60 = vector.broadcast %59 : vector<8x1xi32> to vector<8x128xi32>
    %61 = arith.cmpi eq, %58, %60 : vector<8x128xi32>
    %cst = arith.constant 0.899999976 : f32
    %cst_35 = arith.constant 7.87401571E-4 : f32
    %62 = vector.broadcast %cst : f32 to vector<8x128xf32>
    %63 = vector.broadcast %cst_35 : f32 to vector<8x128xf32>
    %64 = arith.select %61, %62, %63 : vector<8x128xi1>, vector<8x128xf32>
    %c0_36 = arith.constant 0 : index
    %c0_37 = arith.constant 0 : index
    %65 = vector.load %arg5[%c0_36, %c0_37] : memref<8x1xi32, #tpu.memory_space<vmem>>, vector<8x1xi32>
    %66 = vector.broadcast %65 : vector<8x1xi32> to vector<8x128xi32>
    %67 = arith.cmpi eq, %58, %66 : vector<8x128xi32>
    %cst_38 = arith.constant 0.899999976 : f32
    %cst_39 = arith.constant 7.87401571E-4 : f32
    %68 = vector.broadcast %cst_38 : f32 to vector<8x128xf32>
    %69 = vector.broadcast %cst_39 : f32 to vector<8x128xf32>
    %70 = arith.select %67, %68, %69 : vector<8x128xi1>, vector<8x128xf32>
    %71 = arith.subf %70, %64 : vector<8x128xf32>
    %72 = vector.broadcast %57 : vector<8x1xf32> to vector<8x128xf32>
    %73 = arith.mulf %71, %72 : vector<8x128xf32>
    %74 = arith.addf %64, %73 : vector<8x128xf32>
    %c0_40 = arith.constant 0 : index
    %c0_41 = arith.constant 0 : index
    %75 = vector.load %arg8[%c0_40, %c0_41] : memref<8x128xf32, #tpu.memory_space<vmem>>, vector<8x128xf32>
    tpu.vector_store %arg8[%c0_40, %c0_41], %74 {strides = array<i32>} : memref<8x128xf32, #tpu.memory_space<vmem>>, vector<8x128xf32>,
    %c0_i32_42 = arith.constant 0 : i32
    %c0_i32_43 = arith.constant 0 : i32
    %76 = tpu.memref_slice %arg6[%3, %c0_i32_43] : memref<8x1024xf32, #tpu.memory_space<any>> -> memref<1x1024xf32, #tpu.memory_space<any>>
    %c0_i32_44 = arith.constant 0 : i32
    %c0_i32_45 = arith.constant 0 : i32
    %77 = tpu.memref_slice %arg9[%c0_i32_44, %c0_i32_45] : memref<8x1024xf32, #tpu.memory_space<vmem>> -> memref<1x1024xf32, #tpu.memory_space<vmem>>
    %78 = tpu.memref_slice %arg10[%c0_i32_42] : memref<8x!tpu.dma_semaphore, #tpu.memory_space<semaphore_mem>> -> memref<1x!tpu.dma_semaphore, #tpu.memory_space<semaphore_mem>>
    %79 = tpu.memref_squeeze %78 : memref<1x!tpu.dma_semaphore, #tpu.memory_space<semaphore_mem>> -> memref<!tpu.dma_semaphore, #tpu.memory_space<semaphore_mem>>
    tpu.wait_dma2 semaphore(%79 : memref<!tpu.dma_semaphore, #tpu.memory_space<semaphore_mem>>) src(%76 : memref<1x1024xf32, #tpu.memory_space<any>>) dst(%77 : memref<1x1024xf32, #tpu.memory_space<vmem>>)
    %c1_i32_46 = arith.constant 1 : i32
    %c0_i32_47 = arith.constant 0 : i32
    %80 = tpu.memref_slice %arg6[%10, %c0_i32_47] : memref<8x1024xf32, #tpu.memory_space<any>> -> memref<1x1024xf32, #tpu.memory_space<any>>
    %c1_i32_48 = arith.constant 1 : i32
    %c0_i32_49 = arith.constant 0 : i32
    %81 = tpu.memref_slice %arg9[%c1_i32_48, %c0_i32_49] : memref<8x1024xf32, #tpu.memory_space<vmem>> -> memref<1x1024xf32, #tpu.memory_space<vmem>>
    %82 = tpu.memref_slice %arg10[%c1_i32_46] : memref<8x!tpu.dma_semaphore, #tpu.memory_space<semaphore_mem>> -> memref<1x!tpu.dma_semaphore, #tpu.memory_space<semaphore_mem>>
    %83 = tpu.memref_squeeze %82 : memref<1x!tpu.dma_semaphore, #tpu.memory_space<semaphore_mem>> -> memref<!tpu.dma_semaphore, #tpu.memory_space<semaphore_mem>>
    tpu.wait_dma2 semaphore(%83 : memref<!tpu.dma_semaphore, #tpu.memory_space<semaphore_mem>>) src(%80 : memref<1x1024xf32, #tpu.memory_space<any>>) dst(%81 : memref<1x1024xf32, #tpu.memory_space<vmem>>)
    %c2_i32_50 = arith.constant 2 : i32
    %c0_i32_51 = arith.constant 0 : i32
    %84 = tpu.memref_slice %arg6[%17, %c0_i32_51] : memref<8x1024xf32, #tpu.memory_space<any>> -> memref<1x1024xf32, #tpu.memory_space<any>>
    %c2_i32_52 = arith.constant 2 : i32
    %c0_i32_53 = arith.constant 0 : i32
    %85 = tpu.memref_slice %arg9[%c2_i32_52, %c0_i32_53] : memref<8x1024xf32, #tpu.memory_space<vmem>> -> memref<1x1024xf32, #tpu.memory_space<vmem>>
    %86 = tpu.memref_slice %arg10[%c2_i32_50] : memref<8x!tpu.dma_semaphore, #tpu.memory_space<semaphore_mem>> -> memref<1x!tpu.dma_semaphore, #tpu.memory_space<semaphore_mem>>
    %87 = tpu.memref_squeeze %86 : memref<1x!tpu.dma_semaphore, #tpu.memory_space<semaphore_mem>> -> memref<!tpu.dma_semaphore, #tpu.memory_space<semaphore_mem>>
    tpu.wait_dma2 semaphore(%87 : memref<!tpu.dma_semaphore, #tpu.memory_space<semaphore_mem>>) src(%84 : memref<1x1024xf32, #tpu.memory_space<any>>) dst(%85 : memref<1x1024xf32, #tpu.memory_space<vmem>>)
    %c3_i32_54 = arith.constant 3 : i32
    %c0_i32_55 = arith.constant 0 : i32
    %88 = tpu.memref_slice %arg6[%24, %c0_i32_55] : memref<8x1024xf32, #tpu.memory_space<any>> -> memref<1x1024xf32, #tpu.memory_space<any>>
    %c3_i32_56 = arith.constant 3 : i32
    %c0_i32_57 = arith.constant 0 : i32
    %89 = tpu.memref_slice %arg9[%c3_i32_56, %c0_i32_57] : memref<8x1024xf32, #tpu.memory_space<vmem>> -> memref<1x1024xf32, #tpu.memory_space<vmem>>
    %90 = tpu.memref_slice %arg10[%c3_i32_54] : memref<8x!tpu.dma_semaphore, #tpu.memory_space<semaphore_mem>> -> memref<1x!tpu.dma_semaphore, #tpu.memory_space<semaphore_mem>>
    %91 = tpu.memref_squeeze %90 : memref<1x!tpu.dma_semaphore, #tpu.memory_space<semaphore_mem>> -> memref<!tpu.dma_semaphore, #tpu.memory_space<semaphore_mem>>
    tpu.wait_dma2 semaphore(%91 : memref<!tpu.dma_semaphore, #tpu.memory_space<semaphore_mem>>) src(%88 : memref<1x1024xf32, #tpu.memory_space<any>>) dst(%89 : memref<1x1024xf32, #tpu.memory_space<vmem>>)
    %c4_i32_58 = arith.constant 4 : i32
    %c0_i32_59 = arith.constant 0 : i32
    %92 = tpu.memref_slice %arg6[%31, %c0_i32_59] : memref<8x1024xf32, #tpu.memory_space<any>> -> memref<1x1024xf32, #tpu.memory_space<any>>
    %c4_i32_60 = arith.constant 4 : i32
    %c0_i32_61 = arith.constant 0 : i32
    %93 = tpu.memref_slice %arg9[%c4_i32_60, %c0_i32_61] : memref<8x1024xf32, #tpu.memory_space<vmem>> -> memref<1x1024xf32, #tpu.memory_space<vmem>>
    %94 = tpu.memref_slice %arg10[%c4_i32_58] : memref<8x!tpu.dma_semaphore, #tpu.memory_space<semaphore_mem>> -> memref<1x!tpu.dma_semaphore, #tpu.memory_space<semaphore_mem>>
    %95 = tpu.memref_squeeze %94 : memref<1x!tpu.dma_semaphore, #tpu.memory_space<semaphore_mem>> -> memref<!tpu.dma_semaphore, #tpu.memory_space<semaphore_mem>>
    tpu.wait_dma2 semaphore(%95 : memref<!tpu.dma_semaphore, #tpu.memory_space<semaphore_mem>>) src(%92 : memref<1x1024xf32, #tpu.memory_space<any>>) dst(%93 : memref<1x1024xf32, #tpu.memory_space<vmem>>)
    %c5_i32_62 = arith.constant 5 : i32
    %c0_i32_63 = arith.constant 0 : i32
    %96 = tpu.memref_slice %arg6[%38, %c0_i32_63] : memref<8x1024xf32, #tpu.memory_space<any>> -> memref<1x1024xf32, #tpu.memory_space<any>>
    %c5_i32_64 = arith.constant 5 : i32
    %c0_i32_65 = arith.constant 0 : i32
    %97 = tpu.memref_slice %arg9[%c5_i32_64, %c0_i32_65] : memref<8x1024xf32, #tpu.memory_space<vmem>> -> memref<1x1024xf32, #tpu.memory_space<vmem>>
    %98 = tpu.memref_slice %arg10[%c5_i32_62] : memref<8x!tpu.dma_semaphore, #tpu.memory_space<semaphore_mem>> -> memref<1x!tpu.dma_semaphore, #tpu.memory_space<semaphore_mem>>
    %99 = tpu.memref_squeeze %98 : memref<1x!tpu.dma_semaphore, #tpu.memory_space<semaphore_mem>> -> memref<!tpu.dma_semaphore, #tpu.memory_space<semaphore_mem>>
    tpu.wait_dma2 semaphore(%99 : memref<!tpu.dma_semaphore, #tpu.memory_space<semaphore_mem>>) src(%96 : memref<1x1024xf32, #tpu.memory_space<any>>) dst(%97 : memref<1x1024xf32, #tpu.memory_space<vmem>>)
    %c6_i32_66 = arith.constant 6 : i32
    %c0_i32_67 = arith.constant 0 : i32
    %100 = tpu.memref_slice %arg6[%45, %c0_i32_67] : memref<8x1024xf32, #tpu.memory_space<any>> -> memref<1x1024xf32, #tpu.memory_space<any>>
    %c6_i32_68 = arith.constant 6 : i32
    %c0_i32_69 = arith.constant 0 : i32
    %101 = tpu.memref_slice %arg9[%c6_i32_68, %c0_i32_69] : memref<8x1024xf32, #tpu.memory_space<vmem>> -> memref<1x1024xf32, #tpu.memory_space<vmem>>
    %102 = tpu.memref_slice %arg10[%c6_i32_66] : memref<8x!tpu.dma_semaphore, #tpu.memory_space<semaphore_mem>> -> memref<1x!tpu.dma_semaphore, #tpu.memory_space<semaphore_mem>>
    %103 = tpu.memref_squeeze %102 : memref<1x!tpu.dma_semaphore, #tpu.memory_space<semaphore_mem>> -> memref<!tpu.dma_semaphore, #tpu.memory_space<semaphore_mem>>
    tpu.wait_dma2 semaphore(%103 : memref<!tpu.dma_semaphore, #tpu.memory_space<semaphore_mem>>) src(%100 : memref<1x1024xf32, #tpu.memory_space<any>>) dst(%101 : memref<1x1024xf32, #tpu.memory_space<vmem>>)
    %c7_i32_70 = arith.constant 7 : i32
    %c0_i32_71 = arith.constant 0 : i32
    %104 = tpu.memref_slice %arg6[%52, %c0_i32_71] : memref<8x1024xf32, #tpu.memory_space<any>> -> memref<1x1024xf32, #tpu.memory_space<any>>
    %c7_i32_72 = arith.constant 7 : i32
    %c0_i32_73 = arith.constant 0 : i32
    %105 = tpu.memref_slice %arg9[%c7_i32_72, %c0_i32_73] : memref<8x1024xf32, #tpu.memory_space<vmem>> -> memref<1x1024xf32, #tpu.memory_space<vmem>>
    %106 = tpu.memref_slice %arg10[%c7_i32_70] : memref<8x!tpu.dma_semaphore, #tpu.memory_space<semaphore_mem>> -> memref<1x!tpu.dma_semaphore, #tpu.memory_space<semaphore_mem>>
    %107 = tpu.memref_squeeze %106 : memref<1x!tpu.dma_semaphore, #tpu.memory_space<semaphore_mem>> -> memref<!tpu.dma_semaphore, #tpu.memory_space<semaphore_mem>>
    tpu.wait_dma2 semaphore(%107 : memref<!tpu.dma_semaphore, #tpu.memory_space<semaphore_mem>>) src(%104 : memref<1x1024xf32, #tpu.memory_space<any>>) dst(%105 : memref<1x1024xf32, #tpu.memory_space<vmem>>)
    %c0_74 = arith.constant 0 : index
    %c0_75 = arith.constant 0 : index
    %108 = vector.load %arg2[%c0_74, %c0_75] : memref<8x1024xf32, #tpu.memory_space<vmem>>, vector<8x1024xf32>
    %c0_76 = arith.constant 0 : index
    %c0_77 = arith.constant 0 : index
    %109 = vector.load %arg9[%c0_76, %c0_77] : memref<8x1024xf32, #tpu.memory_space<vmem>>, vector<8x1024xf32>
    %110 = arith.subf %109, %108 : vector<8x1024xf32>
    %111 = vector.broadcast %57 : vector<8x1xf32> to vector<8x1024xf32>
    %112 = arith.mulf %110, %111 : vector<8x1024xf32>
    %113 = arith.addf %108, %112 : vector<8x1024xf32>
    %c0_78 = arith.constant 0 : index
    %c0_79 = arith.constant 0 : index
    %114 = vector.load %arg7[%c0_78, %c0_79] : memref<8x1024xf32, #tpu.memory_space<vmem>>, vector<8x1024xf32>
    tpu.vector_store %arg7[%c0_78, %c0_79], %113 {strides = array<i32>} : memref<8x1024xf32, #tpu.memory_space<vmem>>, vector<8x1024xf32>,
    return
  }
  func.func @transform_0(%arg0: i32, %arg1: memref<8xi32, #tpu.memory_space<smem>>) -> (i32, i32) {
    %c0_i32 = arith.constant 0 : i32
    %c0_i32_0 = arith.constant 0 : i32
    return %arg0, %c0_i32 : i32, i32
  }
  func.func @transform_1(%arg0: i32, %arg1: memref<8xi32, #tpu.memory_space<smem>>) -> (i32, i32) {
    %c0_i32 = arith.constant 0 : i32
    %c0_i32_0 = arith.constant 0 : i32
    return %arg0, %c0_i32 : i32, i32
  }
  func.func @transform_2(%arg0: i32, %arg1: memref<8xi32, #tpu.memory_space<smem>>) -> (i32, i32) {
    %c0_i32 = arith.constant 0 : i32
    %c0_i32_0 = arith.constant 0 : i32
    return %arg0, %c0_i32 : i32, i32
  }
  func.func @transform_3(%arg0: i32, %arg1: memref<8xi32, #tpu.memory_space<smem>>) -> (i32, i32) {
    %c0_i32 = arith.constant 0 : i32
    %c0_i32_0 = arith.constant 0 : i32
    return %arg0, %c0_i32 : i32, i32
  }
  func.func @transform_5(%arg0: i32, %arg1: memref<8xi32, #tpu.memory_space<smem>>) -> (i32, i32) {
    %c0_i32 = arith.constant 0 : i32
    %c0_i32_0 = arith.constant 0 : i32
    return %arg0, %c0_i32 : i32, i32
  }
  func.func @transform_6(%arg0: i32, %arg1: memref<8xi32, #tpu.memory_space<smem>>) -> (i32, i32) {
    %c0_i32 = arith.constant 0 : i32
    %c0_i32_0 = arith.constant 0 : i32
    return %arg0, %c0_i32 : i32, i32
  }
}

</mosaic_0001>

<bundles_post_ra>
// kernel: tpu_custom_call.1
= control target key start
LH: loop header
LB: loop body
LE: loop exit
PB: predicated region body
PF: predicated region fallthrough
CT: control target
= control target key end

     0   :  { %s956_s0 = inlined_call_operand.vmem [shape: s32[8], index: 0, kind: input, shape index: {}]   ;;  %s957_s1 = inlined_call_operand.hbm [shape: f32[8,1024], index: 1, kind: input, shape index: {}]   ;;  %s958_s2 = inlined_call_operand.vmem [shape: f32[8,1], index: 2, kind: input, shape index: {}]   ;;  %s959_s3 = inlined_call_operand.vmem [shape: s32[8,1], index: 3, kind: input, shape index: {}]   ;;  %s960_s4 = inlined_call_operand.vmem [shape: s32[8,1], index: 4, kind: input, shape index: {}]   ;;  %s961_s5 = inlined_call_operand.hbm [shape: f32[8,1024], index: 5, kind: input, shape index: {}]   ;;  %s962_s6 = inlined_call_operand.hbm [shape: f32[8,1024], index: 6, kind: output, shape index: {0}]   ;;  %s963_s7 = inlined_call_operand.hbm [shape: f32[8,128], index: 7, kind: output, shape index: {1}]  }
   0x1   :  { %s13_s26 = sshll.u32 %s956_s0, 4  ;;  %s14_s26 = int_to_ptr.vmem [resolvable:$true] %s13_s26 }
   0x2   :  { %s413_s27 = scalar_lea.vmem %s14_s26, 16  ;;  %p418_p1 = scmp.lt.s32.totalorder %s14_s26, %s14_s26 }
   0x3   :  { %p414_p0 = scmp.ne.s32.totalorder %s14_s26, %s413_s27  ;;  %p419_p2 = scmp.lt.s32.totalorder %s413_s27, %s413_s27 }
   0x5   :  { %p420_p3 = por %p419_p2, %p418_p1 }
   0x7   :  { %p421_p4 = pnand %p420_p3, %p414_p0 }
   0x9   :  { %424 = shalt.err (!%p421_p4)  }
   0xa   :  { %s707_s28 = smov [#allocation5]  }
   0xb   :  { %16 = dma.vmem_to_smem %s14_s26, 16, %s707_s28, [#allocation4] }
   0xc   :  { %683 = dma.done.wait [#allocation4], 16 }
   0xd   :  { %684 = vsyncadd [#allocation4], 4294967280 }
   0xe   :  { %18 = sfence }
   0xf   :  { %19 = vsyncpa [#allocation7], 0 }
  0x10   :  { %20 = vsyncpa [#allocation8], 0 }
  0x11   :  { %21 = vsyncpa [#allocation11], 0  ;;  %s708_s29 = smov [#allocation6]   ;;  %s425_s9 = scalar_lea.hbm %s957_s1, 1024 }
  0x12   :  { %s28_s30 = sshll.u32 %s708_s29, 4  ;;  %p426_p5 = scmp.ne.s32.totalorder %s957_s1, %s425_s9  ;;  %s29_s30 = int_to_ptr.vmem [resolvable:$true] %s28_s30 }
  0x13   :  { %p429_p6 = scmp.lt.u32.totalorder %s425_s9, %s957_s1 }
  0x15   :  { %p431_p7 = pnand %p429_p6, %p426_p5 }
  0x17   :  { %434 = shalt.err (!%p431_p7)
}
  0x18   :  { %s435_s14 = scalar_lea.vmem %s29_s30, 1024  ;;  %p440_p9 = scmp.lt.s32.totalorder %s29_s30, %s29_s30 }
  0x19   :  { %p436_p8 = scmp.ne.s32.totalorder %s29_s30, %s435_s14  ;;  %p441_p10 = scmp.lt.s32.totalorder %s435_s14, %s435_s14 }
  0x1b   :  { %p442_p11 = por %p441_p10, %p440_p9 }
  0x1d   :  { %p443_p12 = pnand %p442_p11, %p436_p8 }
  0x1f   :  { %446 = shalt.err (!%p443_p12)
}
  0x20   :  { %31 = dma.hbm_to_vmem [thread:$0]  %s957_s1, 1024, %s29_s30, [#allocation7]  }
  0x21   :  { %685 = dma.done.wait [#allocation7], 1024  }
  0x22   :  { %686 = vsyncadd [#allocation7], 4294966272  ;;  %v709_v0 = vmov 0   ;;  %s42_s17 = sld [smem:[#allocation5]]  ;;  %s778_s18 = sld [smem:[#allocation5 + $0x1]]  ;;  %v162_v1 = vld [vmem:[%s959_s3] sm:$0xff] }
  0x23   :  { %411 = vset.pattern.permute.xlu0 %v709_v0  ;;  %412 = vset.pattern.permute.xlu1 %v709_v0  ;;  %s780_s19 = sld [smem:[#allocation5 + $0x2]]  ;;  %s782_s20 = sld [smem:[#allocation5 + $0x3]]  ;;  %v159_v2 = vld [vmem:[%s958_s2] sm:$0xff] }
  0x24   :  { %s790_s1 = sld [smem:[#allocation5 + $0x4]]  ;;  %s792_s25 = sld [smem:[#allocation5 + $0x5]]  ;;  %164 = vperm.xlu0 %411, %v162_v1   ;;  %177 = vperm.xlu1 %412, %v159_v2   ;;  %v168_v3 = vld [vmem:[%s960_s4] sm:$0xff] }
  0x25   :  { %s794_s27 = sld [smem:[#allocation5 + $0x6]]  ;;  %s710_s9 = smov [#allocation2]  }
  0x26   :  { %s50_s10 = sshll.u32 %s710_s9, 4  ;;  %s807_s16 = scalar_lea.hbm %s961_s5, 1024  ;;  %s802_s10 = int_to_ptr.vmem [resolvable:$true] %s50_s10 }
  0x28   :  { %s43_s26 = sshrl.u32 %s42_s17, 3  ;;  %s44_s30 = sand.u32 7, %s42_s17   ;;  %170 = vperm.xlu0 %411, %v168_v3  }
  0x29   :  { %s364_s0 = sshll.u32 %s43_s26, 6 }
  0x2a   :  { %s46_s3 = sadd.s32 %s364_s0, %s44_s30 }
  0x2b   :  { %s365_s8 = sshll.u32 %s46_s3, 4 }
  0x2c   :  { %s48_s12 = scalar_lea.hbm %s961_s5, %s365_s8 }
  0x2d   :  { %s447_s13 = scalar_lea.hbm %s48_s12, 128  ;;  %p450_p0 = scmp.lt.u32.totalorder %s48_s12, %s961_s5 }
  0x2e   :  { %p448_p13 = scmp.ne.s32.totalorder %s48_s12, %s447_s13  ;;  %p451_p1 = scmp.lt.u32.totalorder %s807_s16, %s447_s13 }
  0x2f   :  { %p453_p3 = scmp.lt.u32.totalorder %s447_s13, %s48_s12 }
  0x30   :  { %p452_p2 = por %p451_p1, %p450_p0 }
  0x32   :  { %p454_p4 = por %p453_p3, %p452_p2 }
  0x34   :  { %p455_p5 = pnand %p454_p4, %p448_p13 }
  0x36   :  { %458 = shalt.err (!%p455_p5)  }
  0x37   :  { %s459_s21 = scalar_lea.vmem %s802_s10, 128  ;;  %s816_s22 = scalar_lea.vmem %s802_s10, 1024 }
  0x38   :  { %p460_p6 = scmp.ne.s32.totalorder %s802_s10, %s459_s21  ;;  %p464_p7 = scmp.lt.s32.totalorder %s802_s10, %s802_s10 }
  0x39   :  { %p465_p8 = scmp.lt.s32.totalorder %s816_s22, %s459_s21 }
  0x3b   :  { %p466_p9 = por %p465_p8, %p464_p7 }
  0x3d   :  { %p467_p10 = pnand %p466_p9, %p460_p6 }
  0x3f   :  { %470 = shalt.err (!%p467_p10)  }
  0x40   :  { %s711_s23 = smov 128   ;;  %s712_s24 = smov 1  }
  0x41   :  { %53 = dma.hbm_to_vmem [thread:$0]  %s48_s12, 128, %s802_s10, [#allocation3], %s711_s23, %s711_s23, %s712_s24 }
  0x42   :  { %s56_s26 = sshrl.u32 %s778_s18, 3  ;;  %s57_s28 = sand.u32 7, %s778_s18  }
  0x43   :  { %s367_s29 = sshll.u32 %s56_s26, 6  ;;  %s713_s0 = smov [#allocation2 + $0x1]  }
  0x44   :  { %s59_s30 = sadd.s32 %s367_s29, %s57_s28  ;;  %s65_s3 = sshll.u32 %s713_s0, 4  ;;  %s66_s3 = int_to_ptr.vmem [resolvable:$true] %s65_s3 }
  0x45   :  { %s368_s8 = sshll.u32 %s59_s30, 4  ;;  %s71_s13 = sshrl.u32 %s780_s19, 3 }
  0x46   :  { %s61_s11 = scalar_lea.hbm %s961_s5, %s368_s8 }
  0x47   :  { %s471_s14 = scalar_lea.hbm %s61_s11, 128  ;;  %p474_p12 = scmp.lt.u32.totalorder %s61_s11, %s961_s5 }
  0x48   :  { %p472_p11 = scmp.ne.s32.totalorder %s61_s11, %s471_s14  ;;  %p475_p13 = scmp.lt.u32.totalorder %s807_s16, %s471_s14 }
  0x49   :  { %p477_p1 = scmp.lt.u32.totalorder %s471_s14, %s61_s11 }
  0x4a   :  { %p476_p0 = por %p475_p13, %p474_p12 }
  0x4c   :  { %p478_p2 = por %p477_p1, %p476_p0 }
  0x4e   :  { %p479_p3 = pnand %p478_p2, %p472_p11 }
  0x50   :  { %482 = shalt.err (!%p479_p3)  }
  0x51   :  { %s483_s18 = scalar_lea.vmem %s66_s3, 128  ;;  %p488_p5 = scmp.lt.s32.totalorder %s66_s3, %s802_s10 }
  0x52   :  { %p484_p4 = scmp.ne.s32.totalorder %s66_s3, %s483_s18  ;;  %p489_p6 = scmp.lt.s32.totalorder %s816_s22, %s483_s18 }
  0x54   :  { %p490_p7 = por %p489_p6, %p488_p5 }
  0x56   :  { %p491_p8 = pnand %p490_p7, %p484_p4 }
  0x58   :  { %494 = shalt.err (!%p491_p8)  }
  0x59   :  { %68 = dma.hbm_to_vmem [thread:$0]  %s61_s11, 128, %s66_s3, [#allocation3 + $0x1], %s711_s23, %s711_s23, %s712_s24 }
  0x5a   :  { %s72_s12 = sand.u32 7, %s780_s19   ;;  %s370_s17 = sshll.u32 %s71_s13, 6 }
  0x5b   :  { %s74_s21 = sadd.s32 %s370_s17, %s72_s12  ;;  %s714_s28 = smov [#allocation2 + $0x2]  }
  0x5c   :  { %s371_s26 = sshll.u32 %s74_s21, 4  ;;  %s80_s29 = sshll.u32 %s714_s28, 4  ;;  %s81_s29 = int_to_ptr.vmem [resolvable:$true] %s80_s29 }
  0x5d   :  { %s76_s8 = scalar_lea.hbm %s961_s5, %s371_s26 }
  0x5e   :  { %s495_s9 = scalar_lea.hbm %s76_s8, 128  ;;  %p498_p10 = scmp.lt.u32.totalorder %s76_s8, %s961_s5 }
  0x5f   :  { %p496_p9 = scmp.ne.s32.totalorder %s76_s8, %s495_s9  ;;  %p499_p11 = scmp.lt.u32.totalorder %s807_s16, %s495_s9 }
  0x60   :  { %p501_p13 = scmp.lt.u32.totalorder %s495_s9, %s76_s8 }
  0x61   :  { %p500_p12 = por %p499_p11, %p498_p10 }
  0x63   :  { %p502_p0 = por %p501_p13, %p500_p12 }
  0x65   :  { %p503_p1 = pnand %p502_p0, %p496_p9 }
  0x67   :  { %506 = shalt.err (!%p503_p1)  }
  0x68   :  { %s507_s19 = scalar_lea.vmem %s81_s29, 128  ;;  %p512_p3 = scmp.lt.s32.totalorder %s81_s29, %s802_s10 }
  0x69   :  { %p508_p2 = scmp.ne.s32.totalorder %s81_s29, %s507_s19  ;;  %p513_p4 = scmp.lt.s32.totalorder %s816_s22, %s507_s19 }
  0x6b   :  { %p514_p5 = por %p513_p4, %p512_p3 }
  0x6d   :  { %p515_p6 = pnand %p514_p5, %p508_p2 }
  0x6f   :  { %518 = shalt.err (!%p515_p6)  }
  0x70   :  { %83 = dma.hbm_to_vmem [thread:$0]  %s76_s8, 128, %s81_s29, [#allocation3 + $0x2], %s711_s23, %s711_s23, %s712_s24 }
  0x71   :  { %s86_s3 = sshrl.u32 %s782_s20, 3  ;;  %s87_s11 = sand.u32 7, %s782_s20  }
  0x72   :  { %s373_s13 = sshll.u32 %s86_s3, 6  ;;  %s715_s4 = smov [#allocation2 + $0x3]  }
  0x73   :  { %s89_s15 = sadd.s32 %s373_s13, %s87_s11  ;;  %s95_s18 = sshll.u32 %s715_s4, 4  ;;  %s96_s18 = int_to_ptr.vmem [resolvable:$true] %s95_s18 }
  0x74   :  { %s374_s12 = sshll.u32 %s89_s15, 4  ;;  %s101_s28 = sshrl.u32 %s790_s1, 3 }
  0x75   :  { %s91_s26 = scalar_lea.hbm %s961_s5, %s374_s12 }
  0x76   :  { %s519_s30 = scalar_lea.hbm %s91_s26, 128  ;;  %p522_p8 = scmp.lt.u32.totalorder %s91_s26, %s961_s5 }
  0x77   :  { %p520_p7 = scmp.ne.s32.totalorder %s91_s26, %s519_s30  ;;  %p523_p9 = scmp.lt.u32.totalorder %s807_s16, %s519_s30 }
  0x78   :  { %p525_p11 = scmp.lt.u32.totalorder %s519_s30, %s91_s26 }
  0x79   :  { %p524_p10 = por %p523_p9, %p522_p8 }
  0x7b   :  { %p526_p12 = por %p525_p11, %p524_p10 }
  0x7d   :  { %p527_p13 = pnand %p526_p12, %p520_p7 }
  0x7f   :  { %530 = shalt.err (!%p527_p13)  }
  0x80   :  { %s531_s20 = scalar_lea.vmem %s96_s18, 128  ;;  %p536_p1 = scmp.lt.s32.totalorder %s96_s18, %s802_s10 }
  0x81   :  { %p532_p0 = scmp.ne.s32.totalorder %s96_s18, %s531_s20  ;;  %p537_p2 = scmp.lt.s32.totalorder %s816_s22, %s531_s20 }
  0x83   :  { %p538_p3 = por %p537_p2, %p536_p1 }
  0x85   :  { %p539_p4 = pnand %p538_p3, %p532_p0 }
  0x87   :  { %542 = shalt.err (!%p539_p4)  }
  0x88   :  { %98 = dma.hbm_to_vmem [thread:$0]  %s91_s26, 128, %s96_s18, [#allocation3 + $0x3], %s711_s23, %s711_s23, %s712_s24 }
  0x89   :  { %s102_s29 = sand.u32 7, %s790_s1   ;;  %s376_s8 = sshll.u32 %s101_s28, 6 }
  0x8a   :  { %s104_s2 = sadd.s32 %s376_s8, %s102_s29  ;;  %s716_s19 = smov [#allocation2 + $0x4]  }
  0x8b   :  { %s377_s14 = sshll.u32 %s104_s2, 4  ;;  %s110_s3 = sshll.u32 %s716_s19, 4  ;;  %s111_s3 = int_to_ptr.vmem [resolvable:$true] %s110_s3 }
  0x8c   :  { %s106_s15 = scalar_lea.hbm %s961_s5, %s377_s14 }
  0x8d   :  { %s543_s4 = scalar_lea.hbm %s106_s15, 128  ;;  %p546_p6 = scmp.lt.u32.totalorder %s106_s15, %s961_s5 }
  0x8e   :  { %p544_p5 = scmp.ne.s32.totalorder %s106_s15, %s543_s4  ;;  %p547_p7 = scmp.lt.u32.totalorder %s807_s16, %s543_s4 }
  0x8f   :  { %p549_p9 = scmp.lt.u32.totalorder %s543_s4, %s106_s15 }
  0x90   :  { %p548_p8 = por %p547_p7, %p546_p6 }
  0x92   :  { %p550_p10 = por %p549_p9, %p548_p8 }
  0x94   :  { %p551_p11 = pnand %p550_p10, %p544_p5 }
  0x96   :  { %554 = shalt.err (!%p551_p11)  }
  0x97   :  { %s555_s1 = scalar_lea.vmem %s111_s3, 128  ;;  %p560_p13 = scmp.lt.s32.totalorder %s111_s3, %s802_s10 }
  0x98   :  { %p556_p12 = scmp.ne.s32.totalorder %s111_s3, %s555_s1  ;;  %p561_p0 = scmp.lt.s32.totalorder %s816_s22, %s555_s1 }
  0x9a   :  { %p562_p1 = por %p561_p0, %p560_p13 }
  0x9c   :  { %p563_p2 = pnand %p562_p1, %p556_p12 }
  0x9e   :  { %566 = shalt.err (!%p563_p2)  }
  0x9f   :  { %113 = dma.hbm_to_vmem [thread:$0]  %s106_s15, 128, %s111_s3, [#allocation3 + $0x4], %s711_s23, %s711_s23, %s712_s24 }
  0xa0   :  { %s116_s18 = sshrl.u32 %s792_s25, 3  ;;  %s117_s21 = sand.u32 7, %s792_s25  }
  0xa1   :  { %s379_s26 = sshll.u32 %s116_s18, 6  ;;  %s717_s30 = smov [#allocation2 + $0x5]  }
  0xa2   :  { %s119_s28 = sadd.s32 %s379_s26, %s117_s21  ;;  %s125_s0 = sshll.u32 %s717_s30, 4  ;;  %s126_s0 = int_to_ptr.vmem [resolvable:$true] %s125_s0 }
  0xa3   :  { %s380_s9 = sshll.u32 %s119_s28, 4  ;;  %s131_s2 = sshrl.u32 %s794_s27, 3 }
  0xa4   :  { %s121_s8 = scalar_lea.hbm %s961_s5, %s380_s9 }
  0xa5   :  { %s567_s14 = scalar_lea.hbm %s121_s8, 128  ;;  %p570_p4 = scmp.lt.u32.totalorder %s121_s8, %s961_s5 }
  0xa6   :  { %p568_p3 = scmp.ne.s32.totalorder %s121_s8, %s567_s14  ;;  %p571_p5 = scmp.lt.u32.totalorder %s807_s16, %s567_s14 }
  0xa7   :  { %p573_p7 = scmp.lt.u32.totalorder %s567_s14, %s121_s8 }
  0xa8   :  { %p572_p6 = por %p571_p5, %p570_p4 }
  0xaa   :  { %p574_p8 = por %p573_p7, %p572_p6 }
  0xac   :  { %p575_p9 = pnand %p574_p8, %p568_p3 }
  0xae   :  { %578 = shalt.err (!%p575_p9)  }
  0xaf   :  { %s579_s25 = scalar_lea.vmem %s126_s0, 128  ;;  %p584_p11 = scmp.lt.s32.totalorder %s126_s0, %s802_s10 }
  0xb0   :  { %p580_p10 = scmp.ne.s32.totalorder %s126_s0, %s579_s25  ;;  %p585_p12 = scmp.lt.s32.totalorder %s816_s22, %s579_s25 }
  0xb2   :  { %p586_p13 = por %p585_p12, %p584_p11 }
  0xb4   :  { %p587_p0 = pnand %p586_p13, %p580_p10 }
  0xb6   :  { %590 = shalt.err (!%p587_p0)  }
  0xb7   :  { %128 = dma.hbm_to_vmem [thread:$0]  %s121_s8, 128, %s126_s0, [#allocation3 + $0x5], %s711_s23, %s711_s23, %s712_s24 }
  0xb8   :  { %s132_s3 = sand.u32 7, %s794_s27   ;;  %s382_s13 = sshll.u32 %s131_s2, 6 }
  0xb9   :  { %s134_s15 = sadd.s32 %s382_s13, %s132_s3  ;;  %s718_s12 = smov [#allocation2 + $0x6]  }
  0xba   :  { %s383_s4 = sshll.u32 %s134_s15, 4  ;;  %s140_s17 = sshll.u32 %s718_s12, 4  ;;  %s141_s17 = int_to_ptr.vmem [resolvable:$true] %s140_s17 }
  0xbb   :  { %s136_s21 = scalar_lea.hbm %s961_s5, %s383_s4 }
  0xbc   :  { %s591_s26 = scalar_lea.hbm %s136_s21, 128  ;;  %p594_p2 = scmp.lt.u32.totalorder %s136_s21, %s961_s5 }
  0xbd   :  { %p592_p1 = scmp.ne.s32.totalorder %s136_s21, %s591_s26  ;;  %p595_p3 = scmp.lt.u32.totalorder %s807_s16, %s591_s26 }
  0xbe   :  { %p597_p5 = scmp.lt.u32.totalorder %s591_s26, %s136_s21 }
  0xbf   :  { %p596_p4 = por %p595_p3, %p594_p2 }
  0xc1   :  { %p598_p6 = por %p597_p5, %p596_p4 }
  0xc3   :  { %p599_p7 = pnand %p598_p6, %p592_p1 }
  0xc5   :  { %602 = shalt.err (!%p599_p7)  }
  0xc6   :  { %s603_s27 = scalar_lea.vmem %s141_s17, 128  ;;  %p608_p9 = scmp.lt.s32.totalorder %s141_s17, %s802_s10 }
  0xc7   :  { %p604_p8 = scmp.ne.s32.totalorder %s141_s17, %s603_s27  ;;  %p609_p10 = scmp.lt.s32.totalorder %s816_s22, %s603_s27 }
  0xc9   :  { %p610_p11 = por %p609_p10, %p608_p9 }
  0xcb   :  { %p611_p12 = pnand %p610_p11, %p604_p8 }
  0xcd   :  { %614 = shalt.err (!%p611_p12)  }
  0xce   :  { %143 = dma.hbm_to_vmem [thread:$0]  %s136_s21, 128, %s141_s17, [#allocation3 + $0x6], %s711_s23, %s711_s23, %s712_s24 }
  0xcf   :  { %s384_s0 = sld [smem:[#allocation5 + $0x7]]  ;;  %s719_s9 = smov [#allocation2 + $0x7]  }
  0xd0   :  { %s155_s20 = sshll.u32 %s719_s9, 4  ;;  %s156_s20 = int_to_ptr.vmem [resolvable:$true] %s155_s20 }
  0xd5   :  { %s146_s29 = sshrl.u32 %s384_s0, 3  ;;  %s147_s8 = sand.u32 7, %s384_s0  }
  0xd6   :  { %s385_s2 = sshll.u32 %s146_s29, 6 }
  0xd7   :  { %s149_s14 = sadd.s32 %s385_s2, %s147_s8 }
  0xd8   :  { %s386_s19 = sshll.u32 %s149_s14, 4 }
  0xd9   :  { %s151_s3 = scalar_lea.hbm %s961_s5, %s386_s19 }
  0xda   :  { %s615_s13 = scalar_lea.hbm %s151_s3, 128  ;;  %p618_p0 = scmp.lt.u32.totalorder %s151_s3, %s961_s5 }
  0xdb   :  { %p616_p13 = scmp.ne.s32.totalorder %s151_s3, %s615_s13  ;;  %p619_p1 = scmp.lt.u32.totalorder %s807_s16, %s615_s13 }
  0xdc   :  { %p621_p3 = scmp.lt.u32.totalorder %s615_s13, %s151_s3 }
  0xdd   :  { %p620_p2 = por %p619_p1, %p618_p0 }
  0xdf   :  { %p622_p4 = por %p621_p3, %p620_p2 }
  0xe1   :  { %p623_p5 = pnand %p622_p4, %p616_p13 }
  0xe3   :  { %626 = shalt.err (!%p623_p5)  }
  0xe4   :  { %s627_s12 = scalar_lea.vmem %s156_s20, 128  ;;  %p632_p7 = scmp.lt.s32.totalorder %s156_s20, %s802_s10 }
  0xe5   :  { %p628_p6 = scmp.ne.s32.totalorder %s156_s20, %s627_s12  ;;  %p633_p8 = scmp.lt.s32.totalorder %s816_s22, %s627_s12 }
  0xe7   :  { %p634_p9 = por %p633_p8, %p632_p7 }
  0xe9   :  { %p635_p10 = pnand %p634_p9, %p628_p6 }
  0xeb   :  { %638 = shalt.err (!%p635_p10)  }
  0xec   :  { %158 = dma.hbm_to_vmem [thread:$0]  %s151_s3, 128, %s156_s20, [#allocation3 + $0x7], %s711_s23, %s711_s23, %s712_s24  ;;  %v160_v4 = vlaneseq  ;;  %v165_v6 = vpop.permute.xlu0 %164  ;;  %v720_v8 = vmov 0.0007874016   ;;  %v921_v11 = vpop.permute.xlu1 %177 }
  0xee   :  { %v161_v5 = vand.u32 127, %v160_v4 }
  0xf0   :  { %vm166_vm0 = vcmp.eq.s32.totalorder %v161_v5, %v165_v6  ;;  %v171_v7 = vpop.permute.xlu0 %170 }
  0xf1   :  { %vm172_vm1 = vcmp.eq.s32.totalorder %v161_v5, %v171_v7  ;;  %v167_v9 = vsel %vm166_vm0, 0.9, %v720_v8 }
  0xf2   :  { %v173_v10 = vsel %vm172_vm1, 0.9, %v720_v8 }
  0xf3   :  { %v174_v12 = vsub.f32 %v173_v10, %v167_v9 }
  0xf5   :  { %v180_v13 = vmul.f32 %v921_v11, %v174_v12 }
  0xf7   :  { %v181_v14 = vadd.f32 %v180_v13, %v167_v9 }
  0xf9   :  { %182 = vst [vmem:[#allocation10] sm:$0xff] %v181_v14 }
  0xfa   :  { %687 = dma.done.wait [#allocation3], 128 }
  0xfb   :  { %688 = vsyncadd [#allocation3], 4294967168 }
  0xfc   :  { %689 = dma.done.wait [#allocation3 + $0x1], 128 }
  0xfd   :  { %690 = vsyncadd [#allocation3 + $0x1], 4294967168 }
  0xfe   :  { %691 = dma.done.wait [#allocation3 + $0x2], 128 }
  0xff   :  { %692 = vsyncadd [#allocation3 + $0x2], 4294967168 }
 0x100   :  { %693 = dma.done.wait [#allocation3 + $0x3], 128 }
 0x101   :  { %694 = vsyncadd [#allocation3 + $0x3], 4294967168 }
 0x102   :  { %695 = dma.done.wait [#allocation3 + $0x4], 128 }
 0x103   :  { %696 = vsyncadd [#allocation3 + $0x4], 4294967168 }
 0x104   :  { %697 = dma.done.wait [#allocation3 + $0x5], 128 }
 0x105   :  { %698 = vsyncadd [#allocation3 + $0x5], 4294967168 }
 0x106   :  { %699 = dma.done.wait [#allocation3 + $0x6], 128 }
 0x107   :  { %700 = vsyncadd [#allocation3 + $0x6], 4294967168 }
 0x108   :  { %701 = dma.done.wait [#allocation3 + $0x7], 128 }
 0x109   :  { %702 = vsyncadd [#allocation3 + $0x7], 4294967168  ;;  %s721_s5 = smov [#allocation10]  }
 0x10a   :  { %s264_s10 = sshll.u32 %s721_s5, 4  ;;  %s265_s10 = int_to_ptr.vmem [resolvable:$true] %s264_s10 }
 0x10b   :  { %s639_s16 = scalar_lea.vmem %s265_s10, 128  ;;  %p644_p12 = scmp.lt.s32.totalorder %s265_s10, %s265_s10 }
 0x10c   :  { %p640_p11 = scmp.ne.s32.totalorder %s265_s10, %s639_s16  ;;  %p645_p13 = scmp.lt.s32.totalorder %s639_s16, %s639_s16 }
 0x10e   :  { %p646_p0 = por %p645_p13, %p644_p12 }
 0x110   :  { %p647_p1 = pnand %p646_p0, %p640_p11 }
 0x112   :  { %650 = shalt.err (!%p647_p1)
}
 0x113   :  { %s651_s24 = scalar_lea.hbm %s963_s7, 128 }
 0x114   :  { %p652_p2 = scmp.ne.s32.totalorder %s963_s7, %s651_s24  ;;  %p655_p3 = scmp.lt.u32.totalorder %s651_s24, %s963_s7 }
 0x116   :  { %p657_p4 = pnand %p655_p3, %p652_p2 }
 0x118   :  { %660 = shalt.err (!%p657_p4)
}
 0x119   :  { %267 = dma.vmem_to_hbm [thread:$0]  %s265_s10, 128, %s963_s7, [#allocation11]   ;;  %v200_v15 = vld [vmem:[#allocation6] sm:$0xff]  ;;  %v201_v17 = vld [vmem:[#allocation6 + $0x8] sm:$0xff]  ;;  %v202_v20 = vld [vmem:[#allocation6 + $0x10] sm:$0xff] }
 0x11a   :  { %v208_v16 = vld [vmem:[#allocation2] sm:$0xff]  ;;  %v209_v19 = vld [vmem:[#allocation2 + $0x8] sm:$0xff]  ;;  %v210_v21 = vld [vmem:[#allocation2 + $0x10] sm:$0xff]  ;;  %s722_s7 = smov [#allocation9]  }
 0x11b   :  { %v216_v18 = vsub.f32 %v208_v16, %v200_v15  ;;  %v217_v22 = vsub.f32 %v209_v19, %v201_v17  ;;  %v218_v23 = vsub.f32 %v210_v21, %v202_v20  ;;  %v203_v24 = vld [vmem:[#allocation6 + $0x18] sm:$0xff]  ;;  %v204_v26 = vld [vmem:[#allocation6 + $0x20] sm:$0xff]  ;;  %v205_v30 = vld [vmem:[#allocation6 + $0x28] sm:$0xff]  ;;  %s254_s30 = sshll.u32 %s722_s7, 4  ;;  %s255_s30 = int_to_ptr.vmem [resolvable:$true] %s254_s30 }
 0x11c   :  { %v211_v25 = vld [vmem:[#allocation2 + $0x18] sm:$0xff]  ;;  %v212_v29 = vld [vmem:[#allocation2 + $0x20] sm:$0xff]  ;;  %v213_v31 = vld [vmem:[#allocation2 + $0x28] sm:$0xff]  ;;  %s661_s27 = scalar_lea.vmem %s255_s30, 1024  ;;  %p666_p6 = scmp.lt.s32.totalorder %s255_s30, %s255_s30 }
 0x11d   :  { %v224_v27 = vmul.f32 %v216_v18, %v921_v11  ;;  %v219_v28 = vsub.f32 %v211_v25, %v203_v24  ;;  %v225_v32 = vmul.f32 %v217_v22, %v921_v11  ;;  %v226_v33 = vmul.f32 %v218_v23, %v921_v11  ;;  %v206_v36 = vld [vmem:[#allocation6 + $0x30] sm:$0xff]  ;;  %v207_v38 = vld [vmem:[#allocation6 + $0x38] sm:$0xff]  ;;  %p662_p5 = scmp.ne.s32.totalorder %s255_s30, %s661_s27  ;;  %p667_p7 = scmp.lt.s32.totalorder %s661_s27, %s661_s27 }
 0x11e   :  { %v220_v34 = vsub.f32 %v212_v29, %v204_v26  ;;  %v221_v35 = vsub.f32 %v213_v31, %v205_v30  ;;  %v214_v37 = vld [vmem:[#allocation2 + $0x30] sm:$0xff]  ;;  %v215_v42 = vld [vmem:[#allocation2 + $0x38] sm:$0xff] }
 0x11f   :  { %v232_v39 = vadd.f32 %v224_v27, %v200_v15  ;;  %v227_v40 = vmul.f32 %v219_v28, %v921_v11  ;;  %v222_v41 = vsub.f32 %v214_v37, %v206_v36  ;;  %v233_v43 = vadd.f32 %v225_v32, %v201_v17  ;;  %p668_p8 = por %p667_p7, %p666_p6 }
 0x120   :  { %v234_v44 = vadd.f32 %v226_v33, %v202_v20  ;;  %v228_v45 = vmul.f32 %v220_v34, %v921_v11  ;;  %v229_v46 = vmul.f32 %v221_v35, %v921_v11  ;;  %v223_v49 = vsub.f32 %v215_v42, %v207_v38 }
 0x121   :  { %240 = vst [vmem:[#allocation9] sm:$0xff] %v232_v39  ;;  %v235_v47 = vadd.f32 %v227_v40, %v203_v24  ;;  %v230_v48 = vmul.f32 %v222_v41, %v921_v11  ;;  %241 = vst [vmem:[#allocation9 + $0x8] sm:$0xff] %v233_v43  ;;  %p669_p9 = pnand %p668_p8, %p662_p5 }
 0x122   :  { %242 = vst [vmem:[#allocation9 + $0x10] sm:$0xff] %v234_v44  ;;  %v236_v50 = vadd.f32 %v228_v45, %v204_v26  ;;  %v237_v51 = vadd.f32 %v229_v46, %v205_v30  ;;  %v231_v53 = vmul.f32 %v223_v49, %v921_v11 }
 0x123   :  { %243 = vst [vmem:[#allocation9 + $0x18] sm:$0xff] %v235_v47  ;;  %v238_v52 = vadd.f32 %v230_v48, %v206_v36 }
 0x124   :  { %244 = vst [vmem:[#allocation9 + $0x20] sm:$0xff] %v236_v50  ;;  %245 = vst [vmem:[#allocation9 + $0x28] sm:$0xff] %v237_v51  ;;  %v239_v54 = vadd.f32 %v231_v53, %v207_v38 }
 0x125   :  { %246 = vst [vmem:[#allocation9 + $0x30] sm:$0xff] %v238_v52 }
 0x126   :  { %247 = vst [vmem:[#allocation9 + $0x38] sm:$0xff] %v239_v54 }
 0x127   :  { %672 = shalt.err (!%p669_p9)
}
 0x128   :  { %s673_s20 = scalar_lea.hbm %s962_s6, 1024 }
 0x129   :  { %p674_p10 = scmp.ne.s32.totalorder %s962_s6, %s673_s20  ;;  %p677_p11 = scmp.lt.u32.totalorder %s673_s20, %s962_s6 }
 0x12b   :  { %p679_p12 = pnand %p677_p11, %p674_p10 }
 0x12d   :  { %682 = shalt.err (!%p679_p12)
}
 0x12e   :  { %257 = dma.vmem_to_hbm [thread:$0]  %s255_s30, 1024, %s962_s6, [#allocation8]  }
 0x12f   :  { %703 = dma.done.wait [#allocation8], 1024  }
 0x130   :  { %704 = vsyncadd [#allocation8], 4294966272 }
 0x131   :  { %705 = dma.done.wait [#allocation11], 128  }
 0x132   :  { %706 = vsyncadd [#allocation11], 4294967168 }
 0x133   :  { %274 = vsyncpa [#allocation7], 1 }
 0x134   :  { %275 = vsyncpa [#allocation8], 1 }
 0x135   :  { %276 = vsyncpa [#allocation11], 1 }
 0x136   :  { %277 = vsyncmov [#allocation3] }
 0x139   :  { %s278_s25 = vpop.sfrf %277 }
 0x13a   :  { %p387_p13 = scmp.ne.s32.totalorder %s278_s25, 0 }
 0x13c   :  { %282 = shalt.err (%p387_p13)  }
 0x13d   :  { %284 = vsyncmov [#allocation3 + $0x1] }
 0x140   :  { %s285_s3 = vpop.sfrf %284 }
 0x141   :  { %p388_p0 = scmp.ne.s32.totalorder %s285_s3, 0 }
 0x143   :  { %289 = shalt.err (%p388_p0)  }
 0x144   :  { %291 = vsyncmov [#allocation3 + $0x2] }
 0x147   :  { %s292_s13 = vpop.sfrf %291 }
 0x148   :  { %p389_p1 = scmp.ne.s32.totalorder %s292_s13, 0 }
 0x14a   :  { %296 = shalt.err (%p389_p1)  }
 0x14b   :  { %298 = vsyncmov [#allocation3 + $0x3] }
 0x14e   :  { %s299_s6 = vpop.sfrf %298 }
 0x14f   :  { %p390_p2 = scmp.ne.s32.totalorder %s299_s6, 0 }
 0x151   :  { %303 = shalt.err (%p390_p2)  }
 0x152   :  { %305 = vsyncmov [#allocation3 + $0x4] }
 0x155   :  { %s306_s15 = vpop.sfrf %305 }
 0x156   :  { %p391_p3 = scmp.ne.s32.totalorder %s306_s15, 0 }
 0x158   :  { %310 = shalt.err (%p391_p3)  }
 0x159   :  { %312 = vsyncmov [#allocation3 + $0x5] }
 0x15c   :  { %s313_s4 = vpop.sfrf %312 }
 0x15d   :  { %p392_p4 = scmp.ne.s32.totalorder %s313_s4, 0 }
 0x15f   :  { %317 = shalt.err (%p392_p4)  }
 0x160   :  { %319 = vsyncmov [#allocation3 + $0x6] }
 0x163   :  { %s320_s12 = vpop.sfrf %319 }
 0x164   :  { %p393_p5 = scmp.ne.s32.totalorder %s320_s12, 0 }
 0x166   :  { %324 = shalt.err (%p393_p5)  }
 0x167   :  { %326 = vsyncmov [#allocation3 + $0x7] }
 0x16a   :  { %s327_s5 = vpop.sfrf %326 }
 0x16b   :  { %p394_p6 = scmp.ne.s32.totalorder %s327_s5, 0 }
 0x16d   :  { %331 = shalt.err (%p394_p6)  }

</bundles_post_ra>
